<compile_context>
chip_gen: v6e
topology: v6e:2x2x1
jax: 0.10.0
libtpu: 0.0.40
codegen_flags: <defaults>
</compile_context>

<pallas_src>
import functools

import jax
import jax.numpy as jnp
from jax.experimental import pallas as pl
from jax.experimental.pallas import tpu as pltpu


def _round_up(x, m):
    return ((x + m - 1) // m) * m


def _vmem_capacity_bytes():
    """Best-effort physical-VMEM query (generation aware); conservative fallback."""
    try:
        info = pltpu.get_tpu_info()
        for attr in ("vmem_capacity_bytes", "vmem_bytes", "vmem_size_bytes"):
            v = getattr(info, attr, None)
            if v:
                return int(v)
    except Exception:
        pass
    return 64 * 1024 * 1024  # v7x-sized fallback: safe on every generation


def _lane_chunk_sum(x, chunk):
    """Sum a (..., T) value over its T//chunk lane-aligned chunks -> (..., chunk).

    The static, 128-multiple lane slices never cross (8,128) vreg tiles (no
    relayout); the pairwise tree is pure VALU adds that stay in vregs, so the
    only VMEM traffic is the single narrow accumulator RMW done by the caller.
    """
    t = x.shape[-1]
    n = t // chunk
    parts = [x[..., k * chunk:(k + 1) * chunk] for k in range(n)]
    while len(parts) > 1:
        nxt = [parts[k] + parts[k + 1] for k in range(0, len(parts) - 1, 2)]
        if len(parts) % 2:
            nxt.append(parts[-1])
        parts = nxt
    return parts[0]


def _loss_kernel(logit_ref, tgt_ref, ce_ref, stats_ref,
                 ce_acc, tp_acc, p_acc, o_acc, *, hw, tile, ntc, chunk):
    """One (batch, pixel-chunk, pixel-tile) grid step.

    logit_ref: (1, C, T) logits, native dtype              [input block]
    tgt_ref:   (1, 1, T) integer class indices             [input block]
    ce_ref:    (1, 1, 1, 1) f32 per-(b,chunk) CE sum       [output block]
    stats_ref: (1, 1, C, 3) f32 per-(b,chunk) [tp, fp, fn] [output block]
    ce_acc:    (1, chunk) f32 narrow CE accumulator        [VMEM scratch]
    tp_acc:    (C, chunk) f32 narrow sum(p * onehot)       [VMEM scratch]
    p_acc:     (C, chunk) f32 narrow sum(p)                [VMEM scratch]
    o_acc:     (C, chunk) f32 narrow sum(onehot)           [VMEM scratch]
    """
    p = pl.program_id(1)
    i = pl.program_id(2)

    @pl.when(i == 0)
    def _():
        ce_acc[...] = jnp.zeros_like(ce_acc)
        tp_acc[...] = jnp.zeros_like(tp_acc)
        p_acc[...] = jnp.zeros_like(p_acc)
        o_acc[...] = jnp.zeros_like(o_acc)

    block_start = (p * ntc + i) * tile

    @pl.when(block_start < hw)           # skip compute on fully-out-of-range steps
    def _():
        logits_raw = logit_ref[0].astype(jnp.float32)       # (C, T)
        tgt = tgt_ref[0].astype(jnp.int32)                  # (1, T)
        C, T = logits_raw.shape

        lane = jax.lax.broadcasted_iota(jnp.int32, (1, T), 1) + block_start
        valid = lane < hw                                    # (1, T) bool
        valid_f = valid.astype(jnp.float32)

        # Sanitize the padded tail once at the source (keeps NaN/Inf garbage out
        # of exp/log/recip).  All remaining masking is cheap (1,T) work.
        logits = jnp.where(valid, logits_raw, 0.0)           # (C, T) select
        tgt_m = jnp.where(valid, tgt, -1)                    # never matches a class

        class_ids = jax.lax.broadcasted_iota(jnp.int32, (C, T), 0)
        onehot = (class_ids == tgt_m).astype(jnp.float32)    # zero on invalid lanes

        # softmax over the class axis (== PyTorch dim=1)
        m = jnp.max(logits, axis=0, keepdims=True)           # (1, T)
        e = jnp.exp(logits - m)                              # (C, T)
        s = jnp.sum(e, axis=0, keepdims=True)                # (1, T)
        inv_s = pl.reciprocal(s, approx=True)
        inv_s = inv_s * (2.0 - s * inv_s)                    # one Newton step (~f32)
        probs = e * (inv_s * valid_f)                        # zero on invalid lanes

        # cross entropy per pixel: logsumexp - logit[target]
        logit_t = jnp.sum(logits * onehot, axis=0, keepdims=True)   # (1, T)
        ce_lane = ((jnp.log(s) + m) - logit_t) * valid_f

        # in-vreg lane-chunk tree reduce, then ONE narrow accumulator RMW each
        ce_acc[...] += _lane_chunk_sum(ce_lane, chunk)
        tp_acc[...] += _lane_chunk_sum(probs * onehot, chunk)
        p_acc[...] += _lane_chunk_sum(probs, chunk)
        o_acc[...] += _lane_chunk_sum(onehot, chunk)

    @pl.when(i == ntc - 1)
    def _():
        tp = jnp.sum(tp_acc[...], axis=1, keepdims=True)      # (C, 1)
        fp = jnp.sum(p_acc[...], axis=1, keepdims=True) - tp  # (C, 1)
        fn = jnp.sum(o_acc[...], axis=1, keepdims=True) - tp  # (C, 1)
        stats_ref[...] = jnp.concatenate([tp, fp, fn], axis=1)[None, None]  # (1,1,C,3)
        ce_ref[...] = jnp.sum(ce_acc[...]).reshape(1, 1, 1, 1)


@functools.partial(jax.jit,
                   static_argnames=("weight_ce", "weight_dice", "smooth", "max_tile"))
def dc_and_ce_loss(net_output, target, *, weight_ce=1.0, weight_dice=1.0,
                   smooth=1e-5, max_tile=32768):
    """net_output: (B, C, H, W) float; target: (B, 1, H, W) int-like."""
    B, C, H, W = net_output.shape
    HW = H * W
    N = B * HW

    # native layout / dtype: reshapes are free, no transpose or upcast in the wrapper
    logits = net_output.reshape(B, C, HW)
    tgt = target.reshape(B, 1, HW)
    if jnp.issubdtype(tgt.dtype, jnp.floating) or tgt.dtype.itemsize > 4:
        tgt = tgt.astype(jnp.int32)            # otherwise keep narrow ints on the wire

    in_itemsize = logits.dtype.itemsize
    tgt_itemsize = tgt.dtype.itemsize

    # ---- generation- and C-aware tile / VMEM sizing ----
    vmem_cap = _vmem_capacity_bytes()
    budget = min(vmem_cap * 3 // 4, 96 * 1024 * 1024)   # ~48 MiB on v7x, 96 MiB on v5e/v6e
    padded_c = max(_round_up(C, 8), 8)
    per_lane = (2 * C * in_itemsize            # double-buffered logits
                + 2 * tgt_itemsize             # double-buffered target
                + 8 * padded_c * 4)            # in-kernel f32 temporaries (estimate)
    tile_cap = max(512, (budget // per_lane) // 512 * 512)
    tile = min(_round_up(max_tile, 128), _round_up(HW, 128), tile_cap)
    chunk = 512 if tile % 512 == 0 else 128    # narrow accumulator width

    nt = pl.cdiv(HW, tile)
    P = 2 if nt >= 2 else 1                    # extra parallel axis keeps both v7x TCs busy at B=1-2
    ntc = pl.cdiv(nt, P)
    last_block = nt - 1

    def pix_block(b, p, i):
        blk = p * ntc + i
        if P * ntc == nt:                      # static check: no clamp needed
            return (b, 0, blk)
        return (b, 0, jnp.minimum(blk, last_block))   # clamped steps are mask-skipped

    kernel = functools.partial(_loss_kernel, hw=HW, tile=tile, ntc=ntc, chunk=chunk)

    ce_part, stats_part = pl.pallas_call(
        kernel,
        out_shape=(jax.ShapeDtypeStruct((B, P, 1, 1), jnp.float32),
                   jax.ShapeDtypeStruct((B, P, C, 3), jnp.float32)),
        grid_spec=pltpu.PrefetchScalarGridSpec(
            num_scalar_prefetch=0,
            grid=(B, P, ntc),
            in_specs=[pl.BlockSpec((1, C, tile), pix_block),
                      pl.BlockSpec((1, 1, tile), pix_block)],
            out_specs=[pl.BlockSpec((1, 1, 1, 1), lambda b, p, i: (b, p, 0, 0)),
                       pl.BlockSpec((1, 1, C, 3), lambda b, p, i: (b, p, 0, 0))],
            scratch_shapes=[pltpu.VMEM((1, chunk), jnp.float32),
                            pltpu.VMEM((C, chunk), jnp.float32),
                            pltpu.VMEM((C, chunk), jnp.float32),
                            pltpu.VMEM((C, chunk), jnp.float32)]),
        compiler_params=pltpu.CompilerParams(
            dimension_semantics=("parallel", "parallel", "arbitrary"),
            vmem_limit_bytes=int(budget)),
        cost_estimate=pl.CostEstimate(
            flops=14 * C * N,
            transcendentals=(C + 2) * N,
            bytes_accessed=C * N * in_itemsize + N * tgt_itemsize + B * P * (3 * C + 1) * 4),
    )(logits, tgt)

    # --- tiny per-class finalization in plain JAX glue ---
    ce_loss = jnp.sum(ce_part) / N                      # reduction='mean'
    stats = jnp.sum(stats_part, axis=(0, 1))            # batch_dice=True: sum over batch & chunks
    tp, fp, fn = stats[:, 0], stats[:, 1], stats[:, 2]
    dc = (2.0 * tp + smooth) / jnp.clip(2.0 * tp + fp + fn + smooth, 1e-8)
    dc_loss = -jnp.mean(dc[1:])                         # do_bg=False (drop background class 0)
    # TODO(synk): ignore_label / pseudo-labeling branch not implemented (ignore_label=None path only).
    return weight_ce * ce_loss + weight_dice * dc_loss


def _reference(net_output, target, *, weight_ce=1.0, weight_dice=1.0, smooth=1e-5):
    """Pure-JAX reference mirroring the PyTorch module."""
    B, C, H, W = net_output.shape
    logits = net_output.astype(jnp.float32)
    tgt = target[:, 0].astype(jnp.int32)                        # (B, H, W)
    log_probs = jax.nn.log_softmax(logits, axis=1)
    ce = -jnp.mean(jnp.take_along_axis(log_probs, tgt[:, None], axis=1))
    probs = jax.nn.softmax(logits, axis=1)
    onehot = jax.nn.one_hot(tgt, C, axis=1, dtype=jnp.float32)  # (B, C, H, W)
    axes = (0, 2, 3)                                            # batch_dice=True
    tp = jnp.sum(probs * onehot, axes)
    fp = jnp.sum(probs * (1.0 - onehot), axes)
    fn = jnp.sum((1.0 - probs) * onehot, axes)
    dc = (2 * tp + smooth) / jnp.clip(2 * tp + fp + fn + smooth, 1e-8)
    dc_loss = -jnp.mean(dc[1:])
    return weight_ce * ce + weight_dice * dc_loss


if __name__ == "__main__":
    key = jax.random.PRNGKey(0)
    k1, k2, k3, k4, k5, k6 = jax.random.split(key, 6)

    # 1) basic shape consistent with the module: (B, C, H, W) + (B, 1, H, W) target
    B, C, H, W = 2, 4, 16, 16
    x = jax.random.normal(k1, (B, C, H, W), dtype=jnp.float32)
    t = jax.random.randint(k2, (B, 1, H, W), 0, C, dtype=jnp.int32)
    out = jax.block_until_ready(dc_and_ce_loss(x, t))
    ref = _reference(x, t)
    assert jnp.allclose(out, ref, rtol=1e-3, atol=1e-4), (out, ref)

    # 2) ragged spatial size (H*W not a multiple of 128) exercises the tail mask
    x2 = jax.random.normal(k3, (2, 4, 10, 10), dtype=jnp.float32)
    t2 = jax.random.randint(k4, (2, 1, 10, 10), 0, 4, dtype=jnp.int32)
    out2 = jax.block_until_ready(dc_and_ce_loss(x2, t2))
    ref2 = _reference(x2, t2)
    assert jnp.allclose(out2, ref2, rtol=1e-3, atol=1e-4), (out2, ref2)

    # 3) multi-tile with an odd tile count: exercises the second parallel (chunk)
    #    axis, block-index clamping, the mask-skipped step and narrow accumulators
    x3 = jax.random.normal(k5, (2, 5, 48, 48), dtype=jnp.float32)
    t3 = jax.random.randint(k6, (2, 1, 48, 48), 0, 5, dtype=jnp.int32)
    out3 = jax.block_until_ready(dc_and_ce_loss(x3, t3, max_tile=512))
    ref3 = _reference(x3, t3)
    assert jnp.allclose(out3, ref3, rtol=1e-3, atol=1e-4), (out3, ref3)

    # 4) bf16 logits travel through the DMA un-upcast (cast happens in-kernel)
    x4 = x.astype(jnp.bfloat16)
    out4 = jax.block_until_ready(dc_and_ce_loss(x4, t))
    ref4 = _reference(x4, t)
    assert jnp.allclose(out4, ref4, rtol=1e-3, atol=1e-4), (out4, ref4)

    print("KERNEL_OK")
</pallas_src>

<mosaic_0001>
module attributes {stable_mosaic.version = 11 : i64} {
  func.func @_loss_kernel(%arg0: i32, %arg1: i32, %arg2: i32, %arg3: memref<1x4x256xf32, #tpu.memory_space<vmem>>, %arg4: memref<1x1x256xi32, #tpu.memory_space<vmem>>, %arg5: memref<1x1x1x1xf32, #tpu.memory_space<vmem>>, %arg6: memref<1x1x4x3xf32, #tpu.memory_space<vmem>>, %arg7: memref<1x128xf32, #tpu.memory_space<vmem>>, %arg8: memref<4x128xf32, #tpu.memory_space<vmem>>, %arg9: memref<4x128xf32, #tpu.memory_space<vmem>>, %arg10: memref<4x128xf32, #tpu.memory_space<vmem>>) attributes {dimension_semantics = [#tpu.dimension_semantics<parallel>, #tpu.dimension_semantics<parallel>, #tpu.dimension_semantics<arbitrary>], iteration_bounds = array<i64: 2, 1, 1>, scalar_prefetch = 0 : i64, scratch_operands = 4 : i64, tpu.core_type = #tpu.core_type<tc>, window_params = [{transform_indices = @transform_0, window_bounds = array<i64: 1, 4, 256>}, {transform_indices = @transform_1, window_bounds = array<i64: 1, 1, 256>}, {transform_indices = @transform_2, window_bounds = array<i64: 1, 1, 1, 1>}, {transform_indices = @transform_3, window_bounds = array<i64: 1, 1, 4, 3>}]} {
    %c0_i32 = arith.constant 0 : i32
    %0 = arith.cmpi eq, %arg2, %c0_i32 : i32
    %1 = arith.extui %0 : i1 to i32
    %c0_i32_0 = arith.constant 0 : i32
    %2 = arith.cmpi ne, %1, %c0_i32_0 : i32
    scf.if %2 {
      %cst = arith.constant 0.000000e+00 : f32
      %12 = vector.broadcast %cst : f32 to vector<1x128xf32>
      %c0 = arith.constant 0 : index
      %c0_5 = arith.constant 0 : index
      %13 = vector.load %arg7[%c0, %c0_5] : memref<1x128xf32, #tpu.memory_space<vmem>>, vector<1x128xf32>
      tpu.vector_store %arg7[%c0, %c0_5], %12 {strides = array<i32>} : memref<1x128xf32, #tpu.memory_space<vmem>>, vector<1x128xf32>,
      %cst_6 = arith.constant 0.000000e+00 : f32
      %14 = vector.broadcast %cst_6 : f32 to vector<4x128xf32>
      %c0_7 = arith.constant 0 : index
      %c0_8 = arith.constant 0 : index
      %15 = vector.load %arg8[%c0_7, %c0_8] : memref<4x128xf32, #tpu.memory_space<vmem>>, vector<4x128xf32>
      tpu.vector_store %arg8[%c0_7, %c0_8], %14 {strides = array<i32>} : memref<4x128xf32, #tpu.memory_space<vmem>>, vector<4x128xf32>,
      %cst_9 = arith.constant 0.000000e+00 : f32
      %16 = vector.broadcast %cst_9 : f32 to vector<4x128xf32>
      %c0_10 = arith.constant 0 : index
      %c0_11 = arith.constant 0 : index
      %17 = vector.load %arg9[%c0_10, %c0_11] : memref<4x128xf32, #tpu.memory_space<vmem>>, vector<4x128xf32>
      tpu.vector_store %arg9[%c0_10, %c0_11], %16 {strides = array<i32>} : memref<4x128xf32, #tpu.memory_space<vmem>>, vector<4x128xf32>,
      %cst_12 = arith.constant 0.000000e+00 : f32
      %18 = vector.broadcast %cst_12 : f32 to vector<4x128xf32>
      %c0_13 = arith.constant 0 : index
      %c0_14 = arith.constant 0 : index
      %19 = vector.load %arg10[%c0_13, %c0_14] : memref<4x128xf32, #tpu.memory_space<vmem>>, vector<4x128xf32>
      tpu.vector_store %arg10[%c0_13, %c0_14], %18 {strides = array<i32>} : memref<4x128xf32, #tpu.memory_space<vmem>>, vector<4x128xf32>,
    } else {
    }
    %c1_i32 = arith.constant 1 : i32
    %3 = arith.muli %arg1, %c1_i32 : i32
    %4 = arith.addi %3, %arg2 : i32
    %c256_i32 = arith.constant 256 : i32
    %5 = arith.muli %4, %c256_i32 : i32
    %c256_i32_1 = arith.constant 256 : i32
    %6 = arith.cmpi slt, %5, %c256_i32_1 : i32
    %7 = arith.extui %6 : i1 to i32
    %c0_i32_2 = arith.constant 0 : i32
    %8 = arith.cmpi ne, %7, %c0_i32_2 : i32
    scf.if %8 {
      %c0 = arith.constant 0 : index
      %c0_5 = arith.constant 0 : index
      %c0_6 = arith.constant 0 : index
      %12 = vector.load %arg3[%c0, %c0_5, %c0_6] : memref<1x4x256xf32, #tpu.memory_space<vmem>>, vector<1x4x256xf32>
      %13 = vector.shape_cast %12 : vector<1x4x256xf32> to vector<4x256xf32>
      %c0_7 = arith.constant 0 : index
      %c0_8 = arith.constant 0 : index
      %c0_9 = arith.constant 0 : index
      %14 = vector.load %arg4[%c0_7, %c0_8, %c0_9] : memref<1x1x256xi32, #tpu.memory_space<vmem>>, vector<1x1x256xi32>
      %15 = vector.shape_cast %14 : vector<1x1x256xi32> to vector<1x256xi32>
      %16 = tpu.iota {dimensions = array<i32: 1>} : vector<1x256xi32>
      %17 = vector.broadcast %5 : i32 to vector<1x256xi32>
      %18 = arith.addi %16, %17 : vector<1x256xi32>
      %c256_i32_10 = arith.constant 256 : i32
      %19 = vector.broadcast %c256_i32_10 : i32 to vector<1x256xi32>
      %20 = arith.cmpi slt, %18, %19 : vector<1x256xi32>
      %21 = arith.extui %20 : vector<1x256xi1> to vector<1x256xi32>
      %22 = arith.sitofp %21 : vector<1x256xi32> to vector<1x256xf32>
      %cst = arith.constant 0.000000e+00 : f32
      %23 = vector.shape_cast %20 : vector<1x256xi1> to vector<1x256xi1>
      %24 = vector.broadcast %23 : vector<1x256xi1> to vector<4x256xi1>
      %25 = vector.broadcast %cst : f32 to vector<4x256xf32>
      %26 = arith.select %24, %13, %25 : vector<4x256xi1>, vector<4x256xf32>
      %c-1_i32 = arith.constant -1 : i32
      %27 = vector.broadcast %c-1_i32 : i32 to vector<1x256xi32>
      %28 = arith.select %20, %15, %27 : vector<1x256xi1>, vector<1x256xi32>
      %29 = tpu.iota {dimensions = array<i32: 0>} : vector<4x256xi32>
      %30 = vector.broadcast %28 : vector<1x256xi32> to vector<4x256xi32>
      %31 = arith.cmpi eq, %29, %30 : vector<4x256xi32>
      %32 = arith.extui %31 : vector<4x256xi1> to vector<4x256xi32>
      %33 = arith.sitofp %32 : vector<4x256xi32> to vector<4x256xf32>
      %cst_11 = arith.constant dense<0xFF800000> : vector<256xf32>
      %34 = vector.multi_reduction <maximumf>, %26, %cst_11 [0] : vector<4x256xf32> to vector<256xf32>
      %35 = vector.shape_cast %34 : vector<256xf32> to vector<1x256xf32>
      %36 = vector.broadcast %35 : vector<1x256xf32> to vector<4x256xf32>
      %37 = arith.subf %26, %36 : vector<4x256xf32>
      %38 = math.exp %37 : vector<4x256xf32>
      %cst_12 = arith.constant dense<0.000000e+00> : vector<256xf32>
      %39 = vector.multi_reduction <add>, %38, %cst_12 [0] : vector<4x256xf32> to vector<256xf32>
      %40 = vector.shape_cast %39 : vector<256xf32> to vector<1x256xf32>
      %41 = tpu.reciprocal %40 {approx = true} : vector<1x256xf32> -> vector<1x256xf32>
      %42 = arith.mulf %40, %41 : vector<1x256xf32>
      %cst_13 = arith.constant 2.000000e+00 : f32
      %43 = vector.broadcast %cst_13 : f32 to vector<1x256xf32>
      %44 = arith.subf %43, %42 : vector<1x256xf32>
      %45 = arith.mulf %41, %44 : vector<1x256xf32>
      %46 = arith.mulf %45, %22 : vector<1x256xf32>
      %47 = vector.broadcast %46 : vector<1x256xf32> to vector<4x256xf32>
      %48 = arith.mulf %38, %47 : vector<4x256xf32>
      %49 = arith.mulf %26, %33 : vector<4x256xf32>
      %cst_14 = arith.constant dense<0.000000e+00> : vector<256xf32>
      %50 = vector.multi_reduction <add>, %49, %cst_14 [0] : vector<4x256xf32> to vector<256xf32>
      %51 = vector.shape_cast %50 : vector<256xf32> to vector<1x256xf32>
      %52 = math.log %40 : vector<1x256xf32>
      %53 = arith.addf %52, %35 : vector<1x256xf32>
      %54 = arith.subf %53, %51 : vector<1x256xf32>
      %55 = arith.mulf %54, %22 : vector<1x256xf32>
      %c0_15 = arith.constant 0 : index
      %c0_16 = arith.constant 0 : index
      %56 = vector.load %arg7[%c0_15, %c0_16] : memref<1x128xf32, #tpu.memory_space<vmem>>, vector<1x128xf32>
      %57 = vector.extract_strided_slice %55 {offsets = [0, 0], sizes = [1, 128], strides = [1, 1]} : vector<1x256xf32> to vector<1x128xf32>
      %58 = vector.extract_strided_slice %55 {offsets = [0, 128], sizes = [1, 128], strides = [1, 1]} : vector<1x256xf32> to vector<1x128xf32>
      %59 = arith.addf %57, %58 : vector<1x128xf32>
      %60 = arith.addf %56, %59 : vector<1x128xf32>
      %c0_17 = arith.constant 0 : index
      %c0_18 = arith.constant 0 : index
      %61 = vector.load %arg7[%c0_17, %c0_18] : memref<1x128xf32, #tpu.memory_space<vmem>>, vector<1x128xf32>
      tpu.vector_store %arg7[%c0_17, %c0_18], %60 {strides = array<i32>} : memref<1x128xf32, #tpu.memory_space<vmem>>, vector<1x128xf32>,
      %c0_19 = arith.constant 0 : index
      %c0_20 = arith.constant 0 : index
      %62 = vector.load %arg8[%c0_19, %c0_20] : memref<4x128xf32, #tpu.memory_space<vmem>>, vector<4x128xf32>
      %63 = arith.mulf %48, %33 : vector<4x256xf32>
      %64 = vector.extract_strided_slice %63 {offsets = [0, 0], sizes = [4, 128], strides = [1, 1]} : vector<4x256xf32> to vector<4x128xf32>
      %65 = vector.extract_strided_slice %63 {offsets = [0, 128], sizes = [4, 128], strides = [1, 1]} : vector<4x256xf32> to vector<4x128xf32>
      %66 = arith.addf %64, %65 : vector<4x128xf32>
      %67 = arith.addf %62, %66 : vector<4x128xf32>
      %c0_21 = arith.constant 0 : index
      %c0_22 = arith.constant 0 : index
      %68 = vector.load %arg8[%c0_21, %c0_22] : memref<4x128xf32, #tpu.memory_space<vmem>>, vector<4x128xf32>
      tpu.vector_store %arg8[%c0_21, %c0_22], %67 {strides = array<i32>} : memref<4x128xf32, #tpu.memory_space<vmem>>, vector<4x128xf32>,
      %c0_23 = arith.constant 0 : index
      %c0_24 = arith.constant 0 : index
      %69 = vector.load %arg9[%c0_23, %c0_24] : memref<4x128xf32, #tpu.memory_space<vmem>>, vector<4x128xf32>
      %70 = vector.extract_strided_slice %48 {offsets = [0, 0], sizes = [4, 128], strides = [1, 1]} : vector<4x256xf32> to vector<4x128xf32>
      %71 = vector.extract_strided_slice %48 {offsets = [0, 128], sizes = [4, 128], strides = [1, 1]} : vector<4x256xf32> to vector<4x128xf32>
      %72 = arith.addf %70, %71 : vector<4x128xf32>
      %73 = arith.addf %69, %72 : vector<4x128xf32>
      %c0_25 = arith.constant 0 : index
      %c0_26 = arith.constant 0 : index
      %74 = vector.load %arg9[%c0_25, %c0_26] : memref<4x128xf32, #tpu.memory_space<vmem>>, vector<4x128xf32>
      tpu.vector_store %arg9[%c0_25, %c0_26], %73 {strides = array<i32>} : memref<4x128xf32, #tpu.memory_space<vmem>>, vector<4x128xf32>,
      %c0_27 = arith.constant 0 : index
      %c0_28 = arith.constant 0 : index
      %75 = vector.load %arg10[%c0_27, %c0_28] : memref<4x128xf32, #tpu.memory_space<vmem>>, vector<4x128xf32>
      %76 = vector.extract_strided_slice %33 {offsets = [0, 0], sizes = [4, 128], strides = [1, 1]} : vector<4x256xf32> to vector<4x128xf32>
      %77 = vector.extract_strided_slice %33 {offsets = [0, 128], sizes = [4, 128], strides = [1, 1]} : vector<4x256xf32> to vector<4x128xf32>
      %78 = arith.addf %76, %77 : vector<4x128xf32>
      %79 = arith.addf %75, %78 : vector<4x128xf32>
      %c0_29 = arith.constant 0 : index
      %c0_30 = arith.constant 0 : index
      %80 = vector.load %arg10[%c0_29, %c0_30] : memref<4x128xf32, #tpu.memory_space<vmem>>, vector<4x128xf32>
      tpu.vector_store %arg10[%c0_29, %c0_30], %79 {strides = array<i32>} : memref<4x128xf32, #tpu.memory_space<vmem>>, vector<4x128xf32>,
    } else {
    }
    %c0_i32_3 = arith.constant 0 : i32
    %9 = arith.cmpi eq, %arg2, %c0_i32_3 : i32
    %10 = arith.extui %9 : i1 to i32
    %c0_i32_4 = arith.constant 0 : i32
    %11 = arith.cmpi ne, %10, %c0_i32_4 : i32
    scf.if %11 {
      %c0 = arith.constant 0 : index
      %c0_5 = arith.constant 0 : index
      %12 = vector.load %arg8[%c0, %c0_5] : memref<4x128xf32, #tpu.memory_space<vmem>>, vector<4x128xf32>
      %cst = arith.constant dense<0.000000e+00> : vector<4xf32>
      %13 = vector.multi_reduction <add>, %12, %cst [1] : vector<4x128xf32> to vector<4xf32>
      %14 = vector.shape_cast %13 : vector<4xf32> to vector<4x1xf32>
      %c0_6 = arith.constant 0 : index
      %c0_7 = arith.constant 0 : index
      %15 = vector.load %arg9[%c0_6, %c0_7] : memref<4x128xf32, #tpu.memory_space<vmem>>, vector<4x128xf32>
      %cst_8 = arith.constant dense<0.000000e+00> : vector<4xf32>
      %16 = vector.multi_reduction <add>, %15, %cst_8 [1] : vector<4x128xf32> to vector<4xf32>
      %17 = vector.shape_cast %16 : vector<4xf32> to vector<4x1xf32>
      %18 = arith.subf %17, %14 : vector<4x1xf32>
      %c0_9 = arith.constant 0 : index
      %c0_10 = arith.constant 0 : index
      %19 = vector.load %arg10[%c0_9, %c0_10] : memref<4x128xf32, #tpu.memory_space<vmem>>, vector<4x128xf32>
      %cst_11 = arith.constant dense<0.000000e+00> : vector<4xf32>
      %20 = vector.multi_reduction <add>, %19, %cst_11 [1] : vector<4x128xf32> to vector<4xf32>
      %21 = vector.shape_cast %20 : vector<4xf32> to vector<4x1xf32>
      %22 = arith.subf %21, %14 : vector<4x1xf32>
      %23 = tpu.concatenate %14, %18, %22 in 1 : vector<4x1xf32>, vector<4x1xf32>, vector<4x1xf32> -> vector<4x3xf32>
      %24 = vector.shape_cast %23 : vector<4x3xf32> to vector<1x1x4x3xf32>
      %c0_12 = arith.constant 0 : index
      %c0_13 = arith.constant 0 : index
      %c0_14 = arith.constant 0 : index
      %c0_15 = arith.constant 0 : index
      %25 = vector.load %arg6[%c0_12, %c0_13, %c0_14, %c0_15] : memref<1x1x4x3xf32, #tpu.memory_space<vmem>>, vector<1x1x4x3xf32>
      tpu.vector_store %arg6[%c0_12, %c0_13, %c0_14, %c0_15], %24 {strides = array<i32>} : memref<1x1x4x3xf32, #tpu.memory_space<vmem>>, vector<1x1x4x3xf32>,
      %c0_16 = arith.constant 0 : index
      %c0_17 = arith.constant 0 : index
      %26 = vector.load %arg7[%c0_16, %c0_17] : memref<1x128xf32, #tpu.memory_space<vmem>>, vector<1x128xf32>
      %27 = vector.shape_cast %26 : vector<1x128xf32> to vector<1x1x128xf32>
      %cst_18 = arith.constant dense<0.000000e+00> : vector<1xf32>
      %28 = vector.multi_reduction <add>, %27, %cst_18 [1, 2] : vector<1x1x128xf32> to vector<1xf32>
      %29 = vector.shape_cast %28 : vector<1xf32> to vector<1x1x1xf32>
      %30 = vector.extract %29[0, 0, 0] : f32 from vector<1x1x1xf32>
      %31 = vector.broadcast %30 : f32 to vector<1x1x1x1xf32>
      %c0_19 = arith.constant 0 : index
      %c0_20 = arith.constant 0 : index
      %c0_21 = arith.constant 0 : index
      %c0_22 = arith.constant 0 : index
      %32 = vector.load %arg5[%c0_19, %c0_20, %c0_21, %c0_22] : memref<1x1x1x1xf32, #tpu.memory_space<vmem>>, vector<1x1x1x1xf32>
      tpu.vector_store %arg5[%c0_19, %c0_20, %c0_21, %c0_22], %31 {strides = array<i32>} : memref<1x1x1x1xf32, #tpu.memory_space<vmem>>, vector<1x1x1x1xf32>,
    } else {
    }
    return
  }
  func.func @transform_0(%arg0: i32, %arg1: i32, %arg2: i32) -> (i32, i32, i32) {
    %c1_i32 = arith.constant 1 : i32
    %0 = arith.muli %arg1, %c1_i32 : i32
    %1 = arith.addi %0, %arg2 : i32
    %c0_i32 = arith.constant 0 : i32
    %c0_i32_0 = arith.constant 0 : i32
    return %arg0, %c0_i32, %1 : i32, i32, i32
  }
  func.func @transform_1(%arg0: i32, %arg1: i32, %arg2: i32) -> (i32, i32, i32) {
    %c1_i32 = arith.constant 1 : i32
    %0 = arith.muli %arg1, %c1_i32 : i32
    %1 = arith.addi %0, %arg2 : i32
    %c0_i32 = arith.constant 0 : i32
    %c0_i32_0 = arith.constant 0 : i32
    return %arg0, %c0_i32, %1 : i32, i32, i32
  }
  func.func @transform_2(%arg0: i32, %arg1: i32, %arg2: i32) -> (i32, i32, i32, i32) {
    %c0_i32 = arith.constant 0 : i32
    %c0_i32_0 = arith.constant 0 : i32
    %c0_i32_1 = arith.constant 0 : i32
    return %arg0, %arg1, %c0_i32, %c0_i32_0 : i32, i32, i32, i32
  }
  func.func @transform_3(%arg0: i32, %arg1: i32, %arg2: i32) -> (i32, i32, i32, i32) {
    %c0_i32 = arith.constant 0 : i32
    %c0_i32_0 = arith.constant 0 : i32
    %c0_i32_1 = arith.constant 0 : i32
    return %arg0, %arg1, %c0_i32, %c0_i32_0 : i32, i32, i32, i32
  }
}

</mosaic_0001>

<bundles_post_ra>
// kernel: dc_and_ce_loss.1
= control target key start
LH: loop header
LB: loop body
LE: loop exit
PB: predicated region body
PF: predicated region fallthrough
CT: control target
= control target key end

     0   :  { %s696_s12 = smov 0   ;;  %s698_s13 = smov 0   ;;  %s760_s0 = inlined_call_operand.vmem [shape: f32[2,4,256], index: 0, kind: input, shape index: {}]   ;;  %s761_s1 = inlined_call_operand.vmem [shape: s32[2,1,256], index: 1, kind: input, shape index: {}]   ;;  %s762_s2 = inlined_call_operand.vmem [shape: f32[2,1,1,1], index: 2, kind: output, shape index: {0}]   ;;  %s763_s3 = inlined_call_operand.vmem [shape: f32[2,1,4,3], index: 3, kind: output, shape index: {1}]  }
   0x1   :  { %s700_s14 = smov 0  }
   0x2 LB: > { %s33_s15 = sadd.s32 1, %s669_s13  ;;  %p601_p0 = scmp.ge.s32.totalorder %s673_s14, 1  ;;  %s673_s14 = sphi %s700_s14, %s14_s14   ;;  %s669_s13 = sphi %s698_s13, %s765_s13   ;;  %s665_s12 = sphi %s696_s12, %s764_s12  }
   0x3   : > { %p35_p1 = scmp.ge.s32.totalorder %s33_s15, 2  ;;  %p194_p2 = scmp.lt.s32.totalorder %s673_s14, 3 }
   0x5   : > { %s767_s15 = smov (%p35_p1, %s33_s15), 0  ;;  %p195_p3 = pnand %p601_p0, %p194_p2 }
   0x6   : > { %p242_p4 = scmp.lt.s32.totalorder (!%p195_p3), %s665_s12, 1 }
   0x7   : > { %198 = sbr.rel (%p195_p3) target bundleno = 297 (0x129), region = 28 }
   0xc   : > { %v311_v0 = vlaneseq  ;;  %v675_v1 = vmov 0.0   ;;  %s769_s12 = smov (!%p242_p4, %s665_s12), 1  ;;  %vm337_vm0 = vcmask 1043456   ;;  %vm453_vm3 = vcmask 1040384  }
   0xd   : > { %280 = vst [vmem:[#allocation2] sm:$0x1] %v675_v1  ;;  %281 = vst [vmem:[#allocation3] sm:$0xf] %v675_v1  ;;  %s610_s16 = sshll.u32 %s769_s12, 3  ;;  %s604_s17 = sshll.u32 %s769_s12, 1 }
   0xe   : > { %282 = vst [vmem:[#allocation4] sm:$0xf] %v675_v1  ;;  %283 = vst [vmem:[#allocation5] sm:$0xf] %v675_v1  ;;  %v312_v2 = vshrl.u32 %v311_v0, 7  ;;  %s249_s20 = scalar_lea.vmem %s760_s0, %s610_s16  ;;  %s260_s23 = scalar_lea.vmem %s761_s1, %s604_s17  ;;  %vm446_vm4 = vcmask 7168  }
   0xf   : > { %v290_v5 = vld [vmem:[%s249_s20] sm:$0xff]  ;;  %s605_s24 = sshll.u32 %s769_s12, 2  ;;  %vm448_vm5 = vcmask 15360   ;;  %vm450_vm6 = vcmask 19456   ;;  %s268_s30 = scalar_lea.vmem %s762_s2, %s769_s12  ;;  %vm465_vm7 = vcmask 0  }
  0x10   : > { %v313_v3 = vsub.s32 0, %v312_v2  ;;  %v317_v4 = vsub.s32 1, %v312_v2  ;;  %v291_v6 = vld [vmem:[%s260_s23] sm:$0x3]  ;;  %v307_v7 = vcombine.high %v290_v5, %v290_v5  ;;  %v338_v10 = vsel %vm337_vm0, %v290_v5, -inf  ;;  %s275_s27 = scalar_lea.vmem %s763_s3, %s605_s24 }
  0x11   : > { %v339_v11 = vrot.slane %v338_v10, 4 }
  0x12   : > { %v314_v8 = vrot.slane %v291_v6, %v313_v3  ;;  %v318_v9 = vrot.slane %v291_v6, %v317_v4  ;;  %v345_v14 = vsel %vm337_vm0, %v307_v7, -inf }
  0x13   : > { %v340_v15 = vmax.f32 %v338_v10, %v339_v11  ;;  %v346_v16 = vrot.slane %v345_v14, 4 }
  0x14   : > { %v326_v12 = vrot.slane %v314_v8, %v313_v3  ;;  %v330_v13 = vrot.slane %v318_v9, %v313_v3 }
  0x15   : > { %v341_v19 = vrot.slane %v340_v15, 2  ;;  %v347_v20 = vmax.f32 %v345_v14, %v346_v16  ;;  %v424_v21 = vld [vmem:[#allocation5] sm:$0xf] }
  0x16   : > { %vm331_vm1 = vcmp.eq.s32.totalorder %v312_v2, %v326_v12  ;;  %vm332_vm2 = vcmp.eq.s32.totalorder %v312_v2, %v330_v13 }
  0x17   : > { %v726_v17 = vsel %vm331_vm1, 1.0, %v675_v1  ;;  %v728_v18 = vsel %vm332_vm2, 1.0, %v675_v1  ;;  %v342_v23 = vmax.f32 %v340_v15, %v341_v19  ;;  %v348_v24 = vrot.slane %v347_v20, 2 }
  0x18   : > { %v425_v22 = vadd.f32 %v728_v18, %v726_v17  ;;  %v384_v37 = vmul.f32 %v726_v17, %v290_v5  ;;  %v385_v41 = vmul.f32 %v728_v18, %v307_v7 }
  0x19   : > { %v343_v26 = vrot.slane %v342_v23, 1  ;;  %v349_v27 = vmax.f32 %v347_v20, %v348_v24  ;;  %v410_v20 = vld [vmem:[#allocation2] sm:$0x1] }
  0x1a   : > { %v426_v25 = vadd.f32 %v425_v22, %v424_v21  ;;  %v386_v44 = vsel %vm337_vm0, %v384_v37, 0.0  ;;  %v393_v47 = vsel %vm337_vm0, %v385_v41, 0.0 }
  0x1b   : > { %v344_v28 = vmax.f32 %v342_v23, %v343_v26  ;;  %v350_v29 = vrot.slane %v349_v27, 1  ;;  %v387_v50 = vrot.slane %v386_v44, 4  ;;  %v394_v53 = vrot.slane %v393_v47, 4 }
  0x1c   : > { %427 = vst [vmem:[#allocation5] sm:$0xf] %v426_v25 }
  0x1d   : > { %v351_v30 = vmax.f32 %v349_v27, %v350_v29  ;;  %v352_v31 = vsub.f32 %v290_v5, %v344_v28  ;;  %v388_v56 = vadd.f32 %v387_v50, %v386_v44  ;;  %v395_v58 = vadd.f32 %v394_v53, %v393_v47  ;;  %v420_v27 = vld [vmem:[#allocation4] sm:$0xf] }
  0x1f   : > { %v353_v32 = vsub.f32 %v307_v7, %v351_v30  ;;  %v354_v33 = vmul.f32 1.442695, %v352_v31  ;;  %v389_v59 = vrot.slane %v388_v56, 2  ;;  %v396_v60 = vrot.slane %v395_v58, 2 }
  0x21   : > { %639 = vpow2.f32 %v354_v33  ;;  %v356_v34 = vmul.f32 1.442695, %v353_v32  ;;  %v390_v61 = vadd.f32 %v389_v59, %v388_v56  ;;  %v397_v62 = vadd.f32 %v396_v60, %v395_v58 }
  0x23   : > { %641 = vpow2.f32 %v356_v34  ;;  %v391_v63 = vrot.slane %v390_v61, 1  ;;  %v398_v0 = vrot.slane %v397_v62, 1  ;;  %v441_v37 = vld [vmem:[#allocation5] sm:$0xf] }
  0x25   : > { %v392_v3 = vadd.f32 %v391_v63, %v390_v61  ;;  %v399_v8 = vadd.f32 %v398_v0, %v397_v62 }
  0x2e   : > { %v640_v35 = vpop.eup %639 }
  0x2f   : > { %v358_v36 = vsel %vm337_vm0, %v640_v35, 0.0 }
  0x30   : > { %v642_v38 = vpop.eup %641  ;;  %v359_v39 = vrot.slane %v358_v36, 4 }
  0x31   : > { %v365_v40 = vsel %vm337_vm0, %v642_v38, 0.0 }
  0x32   : > { %v360_v42 = vadd.f32 %v359_v39, %v358_v36  ;;  %v366_v43 = vrot.slane %v365_v40, 4  ;;  %v442_v39 = vsel %vm337_vm0, %v441_v37, 0.0 }
  0x34   : > { %v361_v45 = vrot.slane %v360_v42, 2  ;;  %v367_v46 = vadd.f32 %v366_v43, %v365_v40 }
  0x36   : > { %v362_v48 = vadd.f32 %v361_v45, %v360_v42  ;;  %v368_v49 = vrot.slane %v367_v46, 2 }
  0x38   : > { %v363_v51 = vrot.slane %v362_v48, 1  ;;  %v369_v52 = vadd.f32 %v368_v49, %v367_v46 }
  0x3a   : > { %v364_v54 = vadd.f32 %v363_v51, %v362_v48  ;;  %v370_v55 = vrot.slane %v369_v52, 1 }
  0x3c   : > { %v371_v57 = vadd.f32 %v370_v55, %v369_v52  ;;  %643 = vlog2.f32 %v364_v54 }
  0x3d   : > { %645 = vrcp.f32 %v364_v54 }
  0x3e   : > { %647 = vlog2.f32 %v371_v57 }
  0x3f   : > { %649 = vrcp.f32 %v371_v57 }
  0x49   : > { %v644_v1 = vpop.eup %643 }
  0x4a   : > { %v646_v2 = vpop.eup %645  ;;  %v401_v4 = vmul.f32 0.6931472, %v644_v1 }
  0x4b   : > { %v648_v5 = vpop.eup %647  ;;  %v374_v6 = vmul.f32 %v646_v2, %v364_v54 }
  0x4c   : > { %v650_v7 = vpop.eup %649  ;;  %v403_v9 = vmul.f32 0.6931472, %v648_v5  ;;  %v404_v10 = vadd.f32 %v401_v4, %v344_v28  ;;  %v414_v28 = vld [vmem:[#allocation3] sm:$0xf] }
  0x4d   : > { %v375_v11 = vmul.f32 %v650_v7, %v371_v57  ;;  %v376_v12 = vsub.f32 2.0, %v374_v6 }
  0x4e   : > { %v405_v13 = vadd.f32 %v403_v9, %v351_v30  ;;  %v406_v14 = vsub.f32 %v404_v10, %v392_v3 }
  0x4f   : > { %v377_v15 = vsub.f32 2.0, %v375_v11  ;;  %v378_v16 = vmul.f32 %v646_v2, %v376_v12 }
  0x50   : > { %v407_v19 = vsub.f32 %v405_v13, %v399_v8 }
  0x51   : > { %v379_v21 = vmul.f32 %v650_v7, %v377_v15  ;;  %v382_v22 = vmul.f32 %v640_v35, %v378_v16 }
  0x52   : > { %v411_v23 = vadd.f32 %v407_v19, %v406_v14 }
  0x53   : > { %v383_v24 = vmul.f32 %v642_v38, %v379_v21  ;;  %v415_v25 = vmul.f32 %v726_v17, %v382_v22 }
  0x54   : > { %v412_v26 = vadd.f32 %v411_v23, %v410_v20 }
  0x55   : > { %v421_v29 = vadd.f32 %v383_v24, %v382_v22  ;;  %v416_v31 = vmul.f32 %v728_v18, %v383_v24 }
  0x56   : > { %413 = vst [vmem:[#allocation2] sm:$0x1] %v412_v26 }
  0x57   : > { %v422_v32 = vadd.f32 %v421_v29, %v420_v27  ;;  %v417_v30 = vadd.f32 %v416_v31, %v415_v25 }
  0x59   : > { %423 = vst [vmem:[#allocation4] sm:$0xf] %v422_v32  ;;  %v418_v33 = vadd.f32 %v417_v30, %v414_v28 }
  0x5b   : > { %419 = vst [vmem:[#allocation3] sm:$0xf] %v418_v33 }
  0x5d   : > { %v452_v34 = vld [vmem:[#allocation2] sm:$0x1] }
  0x5e   : > { %v454_v36 = vsel %vm453_vm3, %v452_v34, 0.0 }
  0x5f   : > { %455 = vadd.xlane.f32.xlu0 %v454_v36 }
  0x60   : > { %v436_v35 = vld [vmem:[#allocation4] sm:$0xf] }
  0x61   : > { %v437_v17 = vsel %vm337_vm0, %v436_v35, 0.0 }
  0x62   : > { %438 = vadd.xlane.f32.xlu1 %v437_v17  ;;  %v431_v38 = vld [vmem:[#allocation3] sm:$0xf] }
  0x63   : > { %v433_v18 = vsel %vm337_vm0, %v431_v38, 0.0 }
  0x64   : > { %434 = vadd.xlane.f32.xlu0 %v433_v18 }
  0x66   : > { %443 = vadd.xlane.f32.xlu1 %v442_v39 }
  0xe8   : > { %v456_v40 = vpop.xlane.xlu0 %455 }
  0xe9   : > { %v457_v41 = vrot.slane %v456_v40, 4 }
  0xeb   : > { %v458_v42 = vadd.f32 %v457_v41, %v456_v40  ;;  %v439_v43 = vpop.xlane.xlu1 %438 }
  0xed   : > { %v459_v44 = vrot.slane %v458_v42, 2  ;;  %v435_v45 = vpop.xlane.xlu0 %434 }
  0xee   : > { %v440_v46 = vsub.f32 %v439_v43, %v435_v45 }
  0xef   : > { %v460_v47 = vadd.f32 %v459_v44, %v458_v42  ;;  %v444_v48 = vpop.xlane.xlu1 %443 }
  0xf0   : > { %v447_v49 = vsel %vm446_vm4, %v435_v45, %v440_v46  ;;  %v445_v50 = vsub.f32 %v444_v48, %v435_v45 }
  0xf1   : > { %v461_v51 = vrot.slane %v460_v47, 1 }
  0xf2   : > { %v449_v52 = vsel %vm448_vm5, %v447_v49, %v445_v50 }
  0xf3   : > { %v462_v53 = vadd.f32 %v461_v51, %v460_v47  ;;  %451 = vst.msk [vmem:[%s275_s27] sm:$0xf] %vm450_vm6, %v449_v52 }
  0xf5   : > { %611 = vpush %v462_v53 }
 0x126   : > { %s612_s4 = spop %611 }
 0x127   : > { %v464_v54 = vstv %s612_s4 }
 0x128   : > { %466 = vst.msk [vmem:[%s268_s30] sm:$0x1] %vm465_vm7, %v464_v54 }
 0x129 PF: > { %s14_s14 = sadd.s32 1, %s673_s14   ;;  %s764_s12 = smov %s669_s13 }
 0x12a   : > { %p11_p5 = scmp.ge.s32.totalorder %s14_s14, 4   ;;  %s765_s13 = smov %s767_s15 }
 0x12c   :  { %13 = sbr.rel (!%p11_p5) target bundleno = 2 (0x2), region = 85 }

</bundles_post_ra>
